<compile_context>
chip_gen: v7x
topology: tpu7x:2x2x1
jax: 0.10.0
libtpu: 0.0.40
codegen_flags: <defaults>
</compile_context>

<pallas_src>
import jax
import jax.numpy as jnp
from jax.experimental import pallas as pl
from jax.experimental.pallas import tpu as pltpu


# ----------------------------- Pallas kernel ------------------------------- #

def fused_convnet_kernel(pt_ref, wc_ref, wl_ref, out_ref, hflat_ref):
    """Fused conv(im2col matmul) + ReLU + NCHW-flatten + linear.

    pt_ref:    (P, N*Sp)     im2col patches, transposed; column = n*Sp + s,
                             s = i*Wo + j, zero-padded for s >= S
    wc_ref:    (C, P)        conv weight, rows = output channels
    wl_ref:    (C*Sp, O)     linear weight, row = c*Sp + s (padded rows zero)
    out_ref:   (N, O)        logits (f32)
    hflat_ref: (N, C*Sp)     VMEM scratch: ReLU(conv), NCHW-flatten, lane-padded
    """
    C = wc_ref.shape[0]
    N, CSp = hflat_ref.shape
    Sp = CSp // C

    # Conv as one MXU matmul, large dim (N*Sp) on lanes; fused ReLU on the VPU.
    g = jnp.maximum(
        jnp.dot(wc_ref[...], pt_ref[...], preferred_element_type=jnp.float32),
        0.0).astype(hflat_ref.dtype)                     # (C, N*Sp)

    # Relayout to PyTorch NCHW flatten order: hflat[n, c*Sp + s] = g[c, n*Sp + s].
    # Sp is a multiple of 128, so every copy is lane-aligned (plain vld/vst,
    # no lane rotate / masked store).  N*C = 8 static copies, VMEM-resident.
    for n in range(N):
        for c in range(C):
            hflat_ref[n:n + 1, c * Sp:(c + 1) * Sp] = g[c:c + 1, n * Sp:(n + 1) * Sp]

    # Linear layer: (N, C*Sp) @ (C*Sp, O) -> (N, O).  O=10 < 128 lanes, but the
    # output is ~1 KB so the masked store is negligible; keeping the weight
    # un-padded on its output dim saves ~360 KB of HBM traffic per call.
    out_ref[...] = jnp.dot(hflat_ref[...], wl_ref[...],
                           preferred_element_type=jnp.float32)


# ------------------------------- Wrapper ------------------------------------ #

def prepare_linear_weight(lin_w_oi, channels, compute_dtype=jnp.float32):
    """One-time (model-init) relayout of the PyTorch Linear weight (O, C*S).

    Rows follow the NCHW-flatten order with the spatial size S zero-padded to
    Sp = next multiple of 128, matching the kernel's hflat scratch layout.
    """
    O, size = lin_w_oi.shape
    S = size // channels
    Sp = ((S + 127) // 128) * 128
    w = lin_w_oi.T.reshape(channels, S, O)            # row c*S+s -> (c, s, :)
    w = jnp.pad(w, ((0, 0), (0, Sp - S), (0, 0)))     # zero padded rows
    return w.reshape(channels * Sp, O).astype(compute_dtype)


def _im2col_patches(x_nchw, KH, KW, Sp, dtype):
    """im2col, built directly in (P, N, Ho, Wo) order (single copy fusion)."""
    N, Cin, H, W = x_nchw.shape
    Ho, Wo = H - KH + 1, W - KW + 1
    P, S = Cin * KH * KW, Ho * Wo
    taps = jnp.stack(
        [x_nchw[:, cin, kh:kh + Ho, kw:kw + Wo]
         for cin in range(Cin) for kh in range(KH) for kw in range(KW)],
        axis=0)                                        # (P, N, Ho, Wo)
    patches = taps.reshape(P, N, S).astype(dtype)
    if Sp > S:
        patches = jnp.pad(patches, ((0, 0), (0, 0), (0, Sp - S)))
    return patches.reshape(P, N * Sp)                  # (P, N*Sp)


def convnet_forward(x_nchw, conv_w_oihw, w_lin_layout):
    """ConvNet.forward for n_layers=2, activation='relu', stride=1, padding=0.
    DFA / DFALayer are identity in the forward pass.  Compute dtype (f32 or
    bf16 with f32 accumulation) follows w_lin_layout's dtype."""
    N, Cin, H, W = x_nchw.shape
    Cout, _, KH, KW = conv_w_oihw.shape
    P = Cin * KH * KW
    Ho, Wo = H - KH + 1, W - KW + 1
    S = Ho * Wo
    CSp, O = w_lin_layout.shape
    Sp = CSp // Cout
    assert Sp % 128 == 0 and Sp >= S
    dtype = w_lin_layout.dtype

    patches_t = _im2col_patches(x_nchw, KH, KW, Sp, dtype)      # (P, N*Sp)
    w_conv_cp = conv_w_oihw.reshape(Cout, P).astype(dtype)      # (C, P) ~0.4 KB

    return pl.pallas_call(
        fused_convnet_kernel,
        out_shape=jax.ShapeDtypeStruct((N, O), jnp.float32),
        in_specs=[
            pl.BlockSpec((P, N * Sp), lambda: (0, 0)),
            pl.BlockSpec((Cout, P), lambda: (0, 0)),
            pl.BlockSpec((CSp, O), lambda: (0, 0)),
        ],
        out_specs=pl.BlockSpec((N, O), lambda: (0, 0)),
        scratch_shapes=[pltpu.VMEM((N, CSp), dtype)],
    )(patches_t, w_conv_cp, w_lin_layout)


# --------------------------------- Main ------------------------------------ #

if __name__ == "__main__":
    key = jax.random.PRNGKey(0)
    k_x, k_conv, k_lin = jax.random.split(key, 3)

    # Shapes consistent with the module: input_size=[3,16,16], channels=4,
    # kernel_size=3, output_size=10, batch=2.
    N, Cin, H, W = 2, 3, 16, 16
    Cout, K = 4, 3
    n_out = 10
    Ho = Wo = (H - K) // 1 + 1          # 14  -> size = 4*14*14 = 784
    size = Cout * Ho * Wo

    x = jax.random.normal(k_x, (N, Cin, H, W), dtype=jnp.float32)
    conv_w = 0.1 * jax.random.normal(k_conv, (Cout, Cin, K, K), dtype=jnp.float32)
    lin_w = 0.05 * jax.random.normal(k_lin, (n_out, size), dtype=jnp.float32)

    # Pure-JAX reference (same semantics as the PyTorch forward), high precision.
    ref_conv = jax.lax.conv_general_dilated(
        x, conv_w, window_strides=(1, 1), padding="VALID",
        dimension_numbers=("NCHW", "OIHW", "NCHW"),
        precision=jax.lax.Precision.HIGHEST)
    ref = jnp.dot(jnp.maximum(ref_conv, 0.0).reshape(N, -1), lin_w.T,
                  precision=jax.lax.Precision.HIGHEST)

    forward = jax.jit(convnet_forward)

    # f32 path: tolerance tight enough to catch any relayout / indexing bug.
    w_lin_f32 = prepare_linear_weight(lin_w, Cout, jnp.float32)   # init-time
    y32 = jax.block_until_ready(forward(x, conv_w, w_lin_f32))
    assert y32.shape == (N, n_out)
    assert jnp.allclose(y32, ref, rtol=5e-3, atol=5e-3), "f32 kernel mismatch"

    # bf16 inputs / f32 accumulation (v6e/v7x perf path): halves dominant DMA.
    w_lin_bf16 = prepare_linear_weight(lin_w, Cout, jnp.bfloat16)  # init-time
    y16 = jax.block_until_ready(forward(x, conv_w, w_lin_bf16))
    assert y16.shape == (N, n_out)
    assert jnp.allclose(y16, ref, rtol=3e-2, atol=3e-2), "bf16 kernel mismatch"

    print("KERNEL_OK")
</pallas_src>

<mosaic_0001>
module attributes {stable_mosaic.version = 11 : i64} {
  func.func @fused_convnet_kernel(%arg0: memref<27x512xf32, #tpu.memory_space<vmem>>, %arg1: memref<4x27xf32, #tpu.memory_space<vmem>>, %arg2: memref<1024x10xf32, #tpu.memory_space<vmem>>, %arg3: memref<2x10xf32, #tpu.memory_space<vmem>>, %arg4: memref<2x1024xf32, #tpu.memory_space<vmem>>) attributes {dimension_semantics = [], scalar_prefetch = 0 : i64, scratch_operands = 1 : i64, tpu.core_type = #tpu.core_type<tc>} {
    %c0 = arith.constant 0 : index
    %c0_0 = arith.constant 0 : index
    %0 = vector.load %arg1[%c0, %c0_0] : memref<4x27xf32, #tpu.memory_space<vmem>>, vector<4x27xf32>
    %c0_1 = arith.constant 0 : index
    %c0_2 = arith.constant 0 : index
    %1 = vector.load %arg0[%c0_1, %c0_2] : memref<27x512xf32, #tpu.memory_space<vmem>>, vector<27x512xf32>
    %cst = arith.constant dense<0.000000e+00> : vector<4x512xf32>
    %2 = tpu.matmul %0, %1, %cst {dimension_numbers = #tpu.dot_dimension_numbers<[1], [0], [0], [1], [0, 0, 1, 1], [], []>} : vector<4x27xf32>, vector<27x512xf32>, vector<4x512xf32> -> vector<4x512xf32>
    %cst_3 = arith.constant 0.000000e+00 : f32
    %3 = vector.broadcast %cst_3 : f32 to vector<4x512xf32>
    %4 = arith.maximumf %2, %3 : vector<4x512xf32>
    %5 = vector.extract_strided_slice %4 {offsets = [0, 0], sizes = [1, 256], strides = [1, 1]} : vector<4x512xf32> to vector<1x256xf32>
    %c0_4 = arith.constant 0 : index
    %c0_5 = arith.constant 0 : index
    %6 = vector.load %arg4[%c0_4, %c0_5] : memref<2x1024xf32, #tpu.memory_space<vmem>>, vector<1x256xf32>
    tpu.vector_store %arg4[%c0_4, %c0_5], %5 {strides = array<i32>} : memref<2x1024xf32, #tpu.memory_space<vmem>>, vector<1x256xf32>,
    %7 = vector.extract_strided_slice %4 {offsets = [1, 0], sizes = [1, 256], strides = [1, 1]} : vector<4x512xf32> to vector<1x256xf32>
    %c0_6 = arith.constant 0 : index
    %c256 = arith.constant 256 : index
    %8 = vector.load %arg4[%c0_6, %c256] : memref<2x1024xf32, #tpu.memory_space<vmem>>, vector<1x256xf32>
    tpu.vector_store %arg4[%c0_6, %c256], %7 {strides = array<i32>} : memref<2x1024xf32, #tpu.memory_space<vmem>>, vector<1x256xf32>,
    %9 = vector.extract_strided_slice %4 {offsets = [2, 0], sizes = [1, 256], strides = [1, 1]} : vector<4x512xf32> to vector<1x256xf32>
    %c0_7 = arith.constant 0 : index
    %c512 = arith.constant 512 : index
    %10 = vector.load %arg4[%c0_7, %c512] : memref<2x1024xf32, #tpu.memory_space<vmem>>, vector<1x256xf32>
    tpu.vector_store %arg4[%c0_7, %c512], %9 {strides = array<i32>} : memref<2x1024xf32, #tpu.memory_space<vmem>>, vector<1x256xf32>,
    %11 = vector.extract_strided_slice %4 {offsets = [3, 0], sizes = [1, 256], strides = [1, 1]} : vector<4x512xf32> to vector<1x256xf32>
    %c0_8 = arith.constant 0 : index
    %c768 = arith.constant 768 : index
    %12 = vector.load %arg4[%c0_8, %c768] : memref<2x1024xf32, #tpu.memory_space<vmem>>, vector<1x256xf32>
    tpu.vector_store %arg4[%c0_8, %c768], %11 {strides = array<i32>} : memref<2x1024xf32, #tpu.memory_space<vmem>>, vector<1x256xf32>,
    %13 = vector.extract_strided_slice %4 {offsets = [0, 256], sizes = [1, 256], strides = [1, 1]} : vector<4x512xf32> to vector<1x256xf32>
    %c1 = arith.constant 1 : index
    %c0_9 = arith.constant 0 : index
    %14 = vector.load %arg4[%c1, %c0_9] : memref<2x1024xf32, #tpu.memory_space<vmem>>, vector<1x256xf32>
    tpu.vector_store %arg4[%c1, %c0_9], %13 {strides = array<i32>} : memref<2x1024xf32, #tpu.memory_space<vmem>>, vector<1x256xf32>,
    %15 = vector.extract_strided_slice %4 {offsets = [1, 256], sizes = [1, 256], strides = [1, 1]} : vector<4x512xf32> to vector<1x256xf32>
    %c1_10 = arith.constant 1 : index
    %c256_11 = arith.constant 256 : index
    %16 = vector.load %arg4[%c1_10, %c256_11] : memref<2x1024xf32, #tpu.memory_space<vmem>>, vector<1x256xf32>
    tpu.vector_store %arg4[%c1_10, %c256_11], %15 {strides = array<i32>} : memref<2x1024xf32, #tpu.memory_space<vmem>>, vector<1x256xf32>,
    %17 = vector.extract_strided_slice %4 {offsets = [2, 256], sizes = [1, 256], strides = [1, 1]} : vector<4x512xf32> to vector<1x256xf32>
    %c1_12 = arith.constant 1 : index
    %c512_13 = arith.constant 512 : index
    %18 = vector.load %arg4[%c1_12, %c512_13] : memref<2x1024xf32, #tpu.memory_space<vmem>>, vector<1x256xf32>
    tpu.vector_store %arg4[%c1_12, %c512_13], %17 {strides = array<i32>} : memref<2x1024xf32, #tpu.memory_space<vmem>>, vector<1x256xf32>,
    %19 = vector.extract_strided_slice %4 {offsets = [3, 256], sizes = [1, 256], strides = [1, 1]} : vector<4x512xf32> to vector<1x256xf32>
    %c1_14 = arith.constant 1 : index
    %c768_15 = arith.constant 768 : index
    %20 = vector.load %arg4[%c1_14, %c768_15] : memref<2x1024xf32, #tpu.memory_space<vmem>>, vector<1x256xf32>
    tpu.vector_store %arg4[%c1_14, %c768_15], %19 {strides = array<i32>} : memref<2x1024xf32, #tpu.memory_space<vmem>>, vector<1x256xf32>,
    %c0_16 = arith.constant 0 : index
    %c0_17 = arith.constant 0 : index
    %21 = vector.load %arg4[%c0_16, %c0_17] : memref<2x1024xf32, #tpu.memory_space<vmem>>, vector<2x1024xf32>
    %c0_18 = arith.constant 0 : index
    %c0_19 = arith.constant 0 : index
    %22 = vector.load %arg2[%c0_18, %c0_19] : memref<1024x10xf32, #tpu.memory_space<vmem>>, vector<1024x10xf32>
    %cst_20 = arith.constant dense<0.000000e+00> : vector<2x10xf32>
    %23 = tpu.matmul %21, %22, %cst_20 {dimension_numbers = #tpu.dot_dimension_numbers<[1], [0], [0], [1], [0, 0, 1, 1], [], []>} : vector<2x1024xf32>, vector<1024x10xf32>, vector<2x10xf32> -> vector<2x10xf32>
    %c0_21 = arith.constant 0 : index
    %c0_22 = arith.constant 0 : index
    %24 = vector.load %arg3[%c0_21, %c0_22] : memref<2x10xf32, #tpu.memory_space<vmem>>, vector<2x10xf32>
    tpu.vector_store %arg3[%c0_21, %c0_22], %23 {strides = array<i32>} : memref<2x10xf32, #tpu.memory_space<vmem>>, vector<2x10xf32>,
    return
  }
}

</mosaic_0001>

<bundles_post_ra>
// kernel: convnet_forward.1
= control target key start
LH: loop header
LB: loop body
LE: loop exit
PB: predicated region body
PF: predicated region fallthrough
CT: control target
= control target key end

     0   :  { %vm36_vm0 = vcmask 1042432   ;;  %v1071_v7 = vmov 0.0   ;;  %vm1072_vm1 = vmmov 1   ;;  %vm32_vm3 = vcmask 220160   ;;  %s1588_s0 = inlined_call_operand.vmem [shape: f32[27,512], index: 0, kind: input, shape index: {}]   ;;  %s1589_s1 = inlined_call_operand.vmem [shape: f32[4,27], index: 1, kind: input, shape index: {}]   ;;  %s1590_s2 = inlined_call_operand.vmem [shape: f32[1024,10], index: 2, kind: input, shape index: {}]   ;;  %s1591_s3 = inlined_call_operand.hbm [shape: f32[2,10], index: 3, kind: output, shape index: {}]  }
   0x1   :  { %v17_v0 = vld [vmem:[%s1588_s0 + $0x8] sm:$0xff]  ;;  %v19_v2 = vld [vmem:[%s1588_s0 + $0x18] sm:$0xff]  ;;  %v16_v5 = vld [vmem:[%s1588_s0] sm:$0xff]  ;;  %113 = vmatprep.mubr.f32.mxu0 %v1071_v7  ;;  %184 = vmatprep.mubr.f32.mxu1 %v1071_v7 }
   0x2   :  { %v21_v1 = vld [vmem:[%s1588_s0 + $0x28] sm:$0xff]  ;;  %v23_v4 = vld [vmem:[%s1588_s0 + $0x38] sm:$0xff]  ;;  %v20_v6 = vld [vmem:[%s1588_s0 + $0x20] sm:$0xff] }
   0x3   :  { %v892_v3 = vpack.c.bf16 %v21_v1, %v17_v0  ;;  %v902_v8 = vpack.c.bf16 %v23_v4, %v19_v2  ;;  %v894_v9 = vpack.c.bf16 %v20_v6, %v16_v5  ;;  %v18_v10 = vld [vmem:[%s1588_s0 + $0x10] sm:$0xff]  ;;  %v25_v12 = vld [vmem:[%s1588_s0 + $0x48] sm:$0xff]  ;;  %vm1127_vm2 = vmpackc.low %vm36_vm0, %vm1072_vm1 }
   0x4   :  { %v22_v11 = vld [vmem:[%s1588_s0 + $0x30] sm:$0xff]  ;;  %v29_v14 = vld [vmem:[%s1588_s0 + $0x68] sm:$0x7]  ;;  %v27_v16 = vld [vmem:[%s1588_s0 + $0x58] sm:$0xff] }
   0x5   :  { %893 = vmatprep.subr.bf16.mxu0 %v892_v3  ;;  %v904_v13 = vpack.c.bf16 %v22_v11, %v18_v10  ;;  %903 = vmatprep.subr.bf16.mxu1 %v902_v8  ;;  %v896_v17 = vpack.c.bf16 %v29_v14, %v25_v12  ;;  %v31_v18 = vld [vmem:[%s1588_s0 + $0x78] sm:$0x7]  ;;  %v24_v19 = vld [vmem:[%s1588_s0 + $0x40] sm:$0xff]  ;;  %v26_v23 = vld [vmem:[%s1588_s0 + $0x50] sm:$0xff] }
   0x6   :  { %895 = vmatpush1.bf16.msra.mxu0 %v894_v9  ;;  %v28_v20 = vld [vmem:[%s1588_s0 + $0x60] sm:$0x7]  ;;  %v906_v21 = vpack.c.bf16 %v31_v18, %v27_v16  ;;  %v30_v24 = vld [vmem:[%s1588_s0 + $0x70] sm:$0x7]  ;;  %v295_v28 = vld [vmem:[%s1590_s2 + $0x88] sm:$0xff] }
   0x7   :  { %905 = vmatpush1.bf16.msra.mxu1 %v904_v13  ;;  %v899_v22 = vpack.c.bf16 %v28_v20, %v24_v19  ;;  %898 = vmatprep.subr.msk.bf16.mxu0 %vm1127_vm2, %v896_v17  ;;  %v909_v25 = vpack.c.bf16 %v30_v24, %v26_v23  ;;  %v15_v26 = vld [vmem:[%s1589_s1] sm:$0xf]  ;;  %v279_v31 = vld [vmem:[%s1590_s2 + $0x8] sm:$0xff]  ;;  %v296_v38 = vld [vmem:[%s1590_s2 + $0x90] sm:$0xff] }
   0x8   :  { %v294_v27 = vld [vmem:[%s1590_s2 + $0x80] sm:$0xff]  ;;  %908 = vmatprep.subr.msk.bf16.mxu1 %vm1127_vm2, %v906_v21  ;;  %v327_v33 = vld [vmem:[%s1590_s2 + $0x188] sm:$0xff]  ;;  %v297_v40 = vld [vmem:[%s1590_s2 + $0x98] sm:$0xff] }
   0x9   :  { %v278_v29 = vld [vmem:[%s1590_s2] sm:$0xff]  ;;  %v912_v30 = vpack.c.bf16 %v295_v28, %v294_v27  ;;  %v311_v37 = vld [vmem:[%s1590_s2 + $0x108] sm:$0xff]  ;;  %v280_v41 = vld [vmem:[%s1590_s2 + $0x10] sm:$0xff]  ;;  %v916_v43 = vpack.c.bf16 %v297_v40, %v296_v38 }
   0xa   :  { %v326_v32 = vld [vmem:[%s1590_s2 + $0x180] sm:$0xff]  ;;  %901 = vmatpush1.bf16.msk.msra.mxu0 %vm1127_vm2, %v899_v22  ;;  %v914_v34 = vpack.c.bf16 %v279_v31, %v278_v29  ;;  %v281_v42 = vld [vmem:[%s1590_s2 + $0x18] sm:$0xff]  ;;  %v328_v44 = vld [vmem:[%s1590_s2 + $0x190] sm:$0xff] }
   0xb   :  { %v944_v35 = vpack.c.bf16 %v327_v33, %v326_v32  ;;  %v310_v36 = vld [vmem:[%s1590_s2 + $0x100] sm:$0xff]  ;;  %911 = vmatpush1.bf16.msk.msra.mxu1 %vm1127_vm2, %v909_v25  ;;  %913 = vmatprep.subr.bf16.mxu0 %v912_v30  ;;  %v329_v45 = vld [vmem:[%s1590_s2 + $0x198] sm:$0xff]  ;;  %v312_v46 = vld [vmem:[%s1590_s2 + $0x110] sm:$0xff] }
   0xc   :  { %v946_v39 = vpack.c.bf16 %v311_v37, %v310_v36  ;;  %v948_v47 = vpack.c.bf16 %v329_v45, %v328_v44  ;;  %v313_v48 = vld [vmem:[%s1590_s2 + $0x118] sm:$0xff] }
   0xd   :  { %945 = vmatprep.subr.bf16.mxu1 %v944_v35  ;;  %748 = vmatmul.mubr.msk.f32.vlgmr.msra.gmra.mrb[0].mxu0 %vm32_vm3, %v15_v26 }
   0xe   :  { %8 = vsyncpa [#allocation4], 0  ;;  %751 = vmatmul.mubr.msk.f32.vlgmr.msra.gmra.mrb[0].mxu1 %vm32_vm3, %v15_v26  ;;  %915 = vmatpush3.bf16.msra.mxu0 %v914_v34  ;;  %v918_v49 = vpack.c.bf16 %v281_v42, %v280_v41  ;;  %v950_v50 = vpack.c.bf16 %v313_v48, %v312_v46  ;;  %v298_v51 = vld [vmem:[%s1590_s2 + $0xa0] sm:$0xff]  ;;  %v299_v52 = vld [vmem:[%s1590_s2 + $0xa8] sm:$0xff]  ;;  %vm730_vm5 = vcmask 74752  }
   0xf   :  { %947 = vmatpush3.bf16.msra.mxu1 %v946_v39  ;;  %917 = vmatprep.subr.bf16.mxu0 %v916_v43  ;;  %v920_v53 = vpack.c.bf16 %v299_v52, %v298_v51  ;;  %v282_v54 = vld [vmem:[%s1590_s2 + $0x20] sm:$0xff]  ;;  %v283_v55 = vld [vmem:[%s1590_s2 + $0x28] sm:$0xff]  ;;  %v300_v63 = vld [vmem:[%s1590_s2 + $0xb0] sm:$0xff] }
  0x10   :  { %949 = vmatprep.subr.bf16.mxu1 %v948_v47  ;;  %v922_v56 = vpack.c.bf16 %v283_v55, %v282_v54  ;;  %v330_v57 = vld [vmem:[%s1590_s2 + $0x1a0] sm:$0xff]  ;;  %v331_v58 = vld [vmem:[%s1590_s2 + $0x1a8] sm:$0xff]  ;;  %v301_v0 = vld [vmem:[%s1590_s2 + $0xb8] sm:$0xff] }
  0x11   :  { %v952_v59 = vpack.c.bf16 %v331_v58, %v330_v57  ;;  %v314_v60 = vld [vmem:[%s1590_s2 + $0x120] sm:$0xff]  ;;  %v315_v61 = vld [vmem:[%s1590_s2 + $0x128] sm:$0xff]  ;;  %v924_v1 = vpack.c.bf16 %v301_v0, %v300_v63  ;;  %v284_v2 = vld [vmem:[%s1590_s2 + $0x30] sm:$0xff] }
  0x12   :  { %919 = vmatpush3.bf16.msra.mxu0 %v918_v49  ;;  %v954_v62 = vpack.c.bf16 %v315_v61, %v314_v60  ;;  %v285_v3 = vld [vmem:[%s1590_s2 + $0x38] sm:$0xff]  ;;  %v332_v5 = vld [vmem:[%s1590_s2 + $0x1b0] sm:$0xff]  ;;  %v302_v11 = vld [vmem:[%s1590_s2 + $0xc0] sm:$0xff] }
  0x13   :  { %951 = vmatpush3.bf16.msra.mxu1 %v950_v50  ;;  %921 = vmatprep.subr.bf16.mxu0 %v920_v53  ;;  %v926_v4 = vpack.c.bf16 %v285_v3, %v284_v2  ;;  %v333_v6 = vld [vmem:[%s1590_s2 + $0x1b8] sm:$0xff]  ;;  %v316_v8 = vld [vmem:[%s1590_s2 + $0x130] sm:$0xff]  ;;  %v303_v12 = vld [vmem:[%s1590_s2 + $0xc8] sm:$0xff]  ;;  %v201_v3 = vlaneseq }
  0x14   :  { %953 = vmatprep.subr.bf16.mxu1 %v952_v59  ;;  %v956_v7 = vpack.c.bf16 %v333_v6, %v332_v5  ;;  %v317_v9 = vld [vmem:[%s1590_s2 + $0x138] sm:$0xff]  ;;  %v928_v13 = vpack.c.bf16 %v303_v12, %v302_v11  ;;  %v286_v14 = vld [vmem:[%s1590_s2 + $0x40] sm:$0xff]  ;;  %v287_v15 = vld [vmem:[%s1590_s2 + $0x48] sm:$0xff] }
  0x15   :  { %v958_v10 = vpack.c.bf16 %v317_v9, %v316_v8  ;;  %v930_v16 = vpack.c.bf16 %v287_v15, %v286_v14  ;;  %v334_v17 = vld [vmem:[%s1590_s2 + $0x1c0] sm:$0xff]  ;;  %v335_v18 = vld [vmem:[%s1590_s2 + $0x1c8] sm:$0xff]  ;;  %v304_v23 = vld [vmem:[%s1590_s2 + $0xd0] sm:$0xff]  ;;  %v202_v5 = vshrl.u32 %v201_v3, 7  ;;  %vm1366_vm4 = vcmp.lt.s32.totalorder %v201_v3, 256 }
  0x16   :  { %923 = vmatpush3.bf16.msra.mxu0 %v922_v56  ;;  %v960_v19 = vpack.c.bf16 %v335_v18, %v334_v17  ;;  %v318_v20 = vld [vmem:[%s1590_s2 + $0x140] sm:$0xff]  ;;  %v319_v21 = vld [vmem:[%s1590_s2 + $0x148] sm:$0xff]  ;;  %v305_v24 = vld [vmem:[%s1590_s2 + $0xd8] sm:$0xff] }
  0x17   :  { %955 = vmatpush3.bf16.msra.mxu1 %v954_v62  ;;  %925 = vmatprep.subr.bf16.mxu0 %v924_v1  ;;  %v962_v22 = vpack.c.bf16 %v319_v21, %v318_v20  ;;  %v932_v25 = vpack.c.bf16 %v305_v24, %v304_v23  ;;  %v288_v26 = vld [vmem:[%s1590_s2 + $0x50] sm:$0xff]  ;;  %v289_v27 = vld [vmem:[%s1590_s2 + $0x58] sm:$0xff]  ;;  %v306_v35 = vld [vmem:[%s1590_s2 + $0xe0] sm:$0xff]  ;;  %v1073_v1 = vmov 1966171168  }
  0x18   :  { %957 = vmatprep.subr.bf16.mxu1 %v956_v7  ;;  %v934_v28 = vpack.c.bf16 %v289_v27, %v288_v26  ;;  %v336_v29 = vld [vmem:[%s1590_s2 + $0x1d0] sm:$0xff]  ;;  %v337_v30 = vld [vmem:[%s1590_s2 + $0x1d8] sm:$0xff]  ;;  %v307_v36 = vld [vmem:[%s1590_s2 + $0xe8] sm:$0xff]  ;;  %v199_v2 = vunpack.c.l.s4 %v1073_v1  ;;  %v1074_v24 = vmov 1983009808  }
  0x19   :  { %v964_v31 = vpack.c.bf16 %v337_v30, %v336_v29  ;;  %v320_v32 = vld [vmem:[%s1590_s2 + $0x150] sm:$0xff]  ;;  %v321_v33 = vld [vmem:[%s1590_s2 + $0x158] sm:$0xff]  ;;  %v936_v37 = vpack.c.bf16 %v307_v36, %v306_v35  ;;  %v290_v38 = vld [vmem:[%s1590_s2 + $0x60] sm:$0xff] }
  0x1a   :  { %927 = vmatpush3.bf16.msra.mxu0 %v926_v4  ;;  %v966_v34 = vpack.c.bf16 %v321_v33, %v320_v32  ;;  %v291_v39 = vld [vmem:[%s1590_s2 + $0x68] sm:$0xff]  ;;  %v338_v40 = vld [vmem:[%s1590_s2 + $0x1e0] sm:$0xff]  ;;  %v308_v47 = vld [vmem:[%s1590_s2 + $0xf0] sm:$0xff]  ;;  %v200_v4 = vunpack.c.0.s8 %v199_v2 }
  0x1b   :  { %959 = vmatpush3.bf16.msra.mxu1 %v958_v10  ;;  %929 = vmatprep.subr.bf16.mxu0 %v928_v13  ;;  %v938_v41 = vpack.c.bf16 %v291_v39, %v290_v38  ;;  %v339_v42 = vld [vmem:[%s1590_s2 + $0x1e8] sm:$0xff]  ;;  %v322_v43 = vld [vmem:[%s1590_s2 + $0x160] sm:$0xff]  ;;  %v309_v48 = vld [vmem:[%s1590_s2 + $0xf8] sm:$0xff] }
  0x1c   :  { %961 = vmatprep.subr.bf16.mxu1 %v960_v19  ;;  %v323_v44 = vld [vmem:[%s1590_s2 + $0x168] sm:$0xff]  ;;  %v968_v45 = vpack.c.bf16 %v339_v42, %v338_v40  ;;  %v292_v49 = vld [vmem:[%s1590_s2 + $0x70] sm:$0xff]  ;;  %v940_v50 = vpack.c.bf16 %v309_v48, %v308_v47  ;;  %v293_v51 = vld [vmem:[%s1590_s2 + $0x78] sm:$0xff]  ;;  %v203_v12 = vsub.s32 %v200_v4, %v202_v5 }
  0x1d   :  { %v970_v46 = vpack.c.bf16 %v323_v44, %v322_v43  ;;  %v340_v52 = vld [vmem:[%s1590_s2 + $0x1f0] sm:$0xff]  ;;  %v341_v53 = vld [vmem:[%s1590_s2 + $0x1f8] sm:$0xff]  ;;  %v942_v54 = vpack.c.bf16 %v293_v51, %v292_v49  ;;  %v358_v59 = vld [vmem:[%s1590_s2 + $0x280] sm:$0xff] }
  0x1e   :  { %931 = vmatpush3.bf16.msra.mxu0 %v930_v16  ;;  %v972_v55 = vpack.c.bf16 %v341_v53, %v340_v52  ;;  %v324_v56 = vld [vmem:[%s1590_s2 + $0x170] sm:$0xff]  ;;  %v325_v57 = vld [vmem:[%s1590_s2 + $0x178] sm:$0xff]  ;;  %v359_v60 = vld [vmem:[%s1590_s2 + $0x288] sm:$0xff] }
  0x1f   :  { %963 = vmatpush3.bf16.msra.mxu1 %v962_v22  ;;  %933 = vmatprep.subr.bf16.mxu0 %v932_v25  ;;  %v974_v58 = vpack.c.bf16 %v325_v57, %v324_v56  ;;  %v976_v61 = vpack.c.bf16 %v359_v60, %v358_v59  ;;  %v390_v62 = vld [vmem:[%s1590_s2 + $0x380] sm:$0xff]  ;;  %v391_v63 = vld [vmem:[%s1590_s2 + $0x388] sm:$0xff]  ;;  %v410_v25 = vunpack.c.l.s4 %v1074_v24  ;;  %v360_v43 = vld [vmem:[%s1590_s2 + $0x290] sm:$0xff] }
  0x20   :  { %965 = vmatprep.subr.bf16.mxu1 %v964_v31  ;;  %v1008_v0 = vpack.c.bf16 %v391_v63, %v390_v62  ;;  %v343_v35 = vld [vmem:[%s1590_s2 + $0x208] sm:$0xff]  ;;  %v374_v39 = vld [vmem:[%s1590_s2 + $0x300] sm:$0xff]  ;;  %v361_v44 = vld [vmem:[%s1590_s2 + $0x298] sm:$0xff] }
  0x21   :  { %v411_v32 = vunpack.c.0.s8 %v410_v25  ;;  %v375_v40 = vld [vmem:[%s1590_s2 + $0x308] sm:$0xff]  ;;  %v392_v49 = vld [vmem:[%s1590_s2 + $0x390] sm:$0xff]  ;;  %v345_v53 = vld [vmem:[%s1590_s2 + $0x218] sm:$0xff]  ;;  %v980_v56 = vpack.c.bf16 %v361_v44, %v360_v43 }
  0x22   :  { %935 = vmatpush3.bf16.msra.mxu0 %v934_v28  ;;  %v1010_v51 = vpack.c.bf16 %v375_v40, %v374_v39  ;;  %v344_v52 = vld [vmem:[%s1590_s2 + $0x210] sm:$0xff]  ;;  %v363_v59 = vld [vmem:[%s1590_s2 + $0x2a8] sm:$0xff]  ;;  %v377_v62 = vld [vmem:[%s1590_s2 + $0x318] sm:$0xff] }
  0x23   :  { %967 = vmatpush3.bf16.msra.mxu1 %v966_v34  ;;  %937 = vmatprep.subr.bf16.mxu0 %v936_v37  ;;  %v414_v33 = vsub.s32 %v411_v32, %v202_v5  ;;  %v342_v34 = vld [vmem:[%s1590_s2 + $0x200] sm:$0xff]  ;;  %v395_v2 = vld [vmem:[%s1590_s2 + $0x3a8] sm:$0xff]  ;;  %v369_v32 = vld [vmem:[%s1590_s2 + $0x2d8] sm:$0xff] }
  0x24   :  { %969 = vmatprep.subr.bf16.mxu1 %v968_v45  ;;  %v394_v1 = vld [vmem:[%s1590_s2 + $0x3a0] sm:$0xff]  ;;  %v347_v5 = vld [vmem:[%s1590_s2 + $0x228] sm:$0xff]  ;;  %v352_v40 = vld [vmem:[%s1590_s2 + $0x250] sm:$0xff] }
  0x25   :  { %v346_v4 = vld [vmem:[%s1590_s2 + $0x220] sm:$0xff]  ;;  %v371_v44 = vld [vmem:[%s1590_s2 + $0x2e8] sm:$0xff] }
  0x26   :  { %939 = vmatpush3.bf16.msra.mxu0 %v938_v41  ;;  %v978_v41 = vpack.c.bf16 %v343_v35, %v342_v34  ;;  %v398_v25 = vld [vmem:[%s1590_s2 + $0x3c0] sm:$0xff]  ;;  %v383_v35 = vld [vmem:[%s1590_s2 + $0x348] sm:$0xff] }
  0x27   :  { %971 = vmatpush3.bf16.msra.mxu1 %v970_v46  ;;  %941 = vmatprep.subr.bf16.mxu0 %v940_v50  ;;  %v393_v50 = vld [vmem:[%s1590_s2 + $0x398] sm:$0xff]  ;;  %v382_v34 = vld [vmem:[%s1590_s2 + $0x340] sm:$0xff] }
  0x28   :  { %973 = vmatprep.subr.bf16.mxu1 %v972_v55  ;;  %v1012_v60 = vpack.c.bf16 %v393_v50, %v392_v49  ;;  %v370_v43 = vld [vmem:[%s1590_s2 + $0x2e0] sm:$0xff] }
  0x29   :  { %v402_v50 = vld [vmem:[%s1590_s2 + $0x3e0] sm:$0xff] }
  0x2a   :  { %943 = vmatpush3.bf16.msra.mxu0 %v942_v54 }
  0x2b   :  { %975 = vmatpush3.bf16.msra.mxu1 %v974_v58  ;;  %977 = vmatprep.subr.bf16.mxu0 %v976_v61  ;;  %v362_v58 = vld [vmem:[%s1590_s2 + $0x2a0] sm:$0xff]  ;;  %v376_v61 = vld [vmem:[%s1590_s2 + $0x310] sm:$0xff] }
  0x2c   :  { %1009 = vmatprep.subr.bf16.mxu1 %v1008_v0  ;;  %v982_v0 = vpack.c.bf16 %v345_v53, %v344_v52  ;;  %v984_v3 = vpack.c.bf16 %v363_v59, %v362_v58  ;;  %v1000_v52 = vpack.c.bf16 %v371_v44, %v370_v43  ;;  %v354_v53 = vld [vmem:[%s1590_s2 + $0x260] sm:$0xff]  ;;  %v373_v58 = vld [vmem:[%s1590_s2 + $0x2f8] sm:$0xff] }
  0xe0   :  { %v115_v6 = vpop.f32.mrb[0].mxu0 }
  0xe1   :  { %v191_v7 = vmax.f32 %v115_v6, 0.0  ;;  %v186_v8 = vpop.f32.mrb[0].mxu1  ;;  %v117_v9 = vpop.f32.mrb[1].mxu0  ;;  %v1014_v6 = vpack.c.bf16 %v377_v62, %v376_v61  ;;  %v387_v61 = vld [vmem:[%s1590_s2 + $0x368] sm:$0xff] }
  0xe2   :  { %v193_v10 = vmax.f32 %v186_v8, 0.0  ;;  %v192_v11 = vmax.f32 %v117_v9, 0.0  ;;  %v188_v13 = vpop.f32.mrb[1].mxu1  ;;  %v365_v8 = vld [vmem:[%s1590_s2 + $0x2b8] sm:$0xff]  ;;  %v1016_v9 = vpack.c.bf16 %v395_v2, %v394_v1  ;;  %v356_v2 = vld [vmem:[%s1590_s2 + $0x270] sm:$0xff] }
  0xe3   :  { %v194_v14 = vmax.f32 %v188_v13, 0.0  ;;  %v396_v13 = vld [vmem:[%s1590_s2 + $0x3b0] sm:$0xff] }
  0xe4   :  { %v197_v15 = vcombine.low %v191_v7, %v192_v11  ;;  %v364_v7 = vld [vmem:[%s1590_s2 + $0x2b0] sm:$0xff]  ;;  %v379_v11 = vld [vmem:[%s1590_s2 + $0x328] sm:$0xff] }
  0xe5   :  { %v239_v16 = vcombine.low %v193_v10, %v194_v14  ;;  %v378_v10 = vld [vmem:[%s1590_s2 + $0x320] sm:$0xff]  ;;  %v397_v14 = vld [vmem:[%s1590_s2 + $0x3b8] sm:$0xff] }
  0xe6   :  { %v204_v17 = vrot.slane %v197_v15, %v203_v12  ;;  %v988_v15 = vpack.c.bf16 %v365_v8, %v364_v7  ;;  %v1018_v18 = vpack.c.bf16 %v379_v11, %v378_v10  ;;  %v389_v7 = vld [vmem:[%s1590_s2 + $0x378] sm:$0xff] }
  0xe7   :  { %v246_v19 = vrot.slane %v239_v16, %v203_v12  ;;  %v348_v16 = vld [vmem:[%s1590_s2 + $0x230] sm:$0xff] }
  0xe8   :  { %v211_v20 = vrot.slane %v204_v17, %v203_v12  ;;  %v218_v21 = vcombine.high %v204_v17, %v204_v17  ;;  %v349_v17 = vld [vmem:[%s1590_s2 + $0x238] sm:$0xff] }
  0xe9   :  { %v253_v22 = vrot.slane %v246_v19, %v203_v12  ;;  %v257_v23 = vcombine.high %v246_v19, %v246_v19  ;;  %v366_v19 = vld [vmem:[%s1590_s2 + $0x2c0] sm:$0xff]  ;;  %v990_v24 = vpack.c.bf16 %v349_v17, %v348_v16 }
  0xea   :  { %217 = vst.msk [vmem:[#allocation2] ss:$2 sm:$0x3] %vm1366_vm4, %v211_v20  ;;  %v225_v26 = vrot.slane %v218_v21, %v203_v12  ;;  %v229_v27 = vcombine.high %v211_v20, %v211_v20  ;;  %v367_v20 = vld [vmem:[%s1590_s2 + $0x2c8] sm:$0xff]  ;;  %v1020_v21 = vpack.c.bf16 %v397_v14, %v396_v13 }
  0xeb   :  { %256 = vst.msk [vmem:[#allocation2 + $0x1] ss:$2 sm:$0x3] %vm1366_vm4, %v253_v22  ;;  %v264_v28 = vrot.slane %v257_v23, %v203_v12  ;;  %v268_v29 = vcombine.high %v253_v22, %v253_v22  ;;  %v986_v12 = vpack.c.bf16 %v347_v5, %v346_v4  ;;  %v380_v22 = vld [vmem:[%s1590_s2 + $0x330] sm:$0xff]  ;;  %v381_v23 = vld [vmem:[%s1590_s2 + $0x338] sm:$0xff] }
  0xec   :  { %228 = vst.msk [vmem:[#allocation2 + $0x4] ss:$2 sm:$0x3] %vm1366_vm4, %v225_v26  ;;  %232 = vst.msk [vmem:[#allocation2 + $0x8] ss:$2 sm:$0x3] %vm1366_vm4, %v229_v27  ;;  %v233_v30 = vcombine.high %v225_v26, %v225_v26  ;;  %v992_v27 = vpack.c.bf16 %v367_v20, %v366_v19 }
  0xed   :  { %267 = vst.msk [vmem:[#allocation2 + $0x5] ss:$2 sm:$0x3] %vm1366_vm4, %v264_v28  ;;  %271 = vst.msk [vmem:[#allocation2 + $0x9] ss:$2 sm:$0x3] %vm1366_vm4, %v268_v29  ;;  %v272_v31 = vcombine.high %v264_v28, %v264_v28 }
  0xee   :  { %236 = vst.msk [vmem:[#allocation2 + $0xc] ss:$2 sm:$0x3] %vm1366_vm4, %v233_v30  ;;  %v399_v26 = vld [vmem:[%s1590_s2 + $0x3c8] sm:$0xff]  ;;  %v350_v28 = vld [vmem:[%s1590_s2 + $0x240] sm:$0xff]  ;;  %v1022_v30 = vpack.c.bf16 %v381_v23, %v380_v22 }
  0xef   :  { %275 = vst.msk [vmem:[#allocation2 + $0xd] ss:$2 sm:$0x3] %vm1366_vm4, %v272_v31  ;;  %v351_v29 = vld [vmem:[%s1590_s2 + $0x248] sm:$0xff]  ;;  %v368_v31 = vld [vmem:[%s1590_s2 + $0x2d0] sm:$0xff] }
  0xf0   :  { %v996_v39 = vpack.c.bf16 %v369_v32, %v368_v31 }
  0xf4   :  { %v276_v36 = vld [vmem:[#allocation2] sm:$0xff] }
  0xf5   :  { %v415_v37 = vrot.slane %v276_v36, %v414_v33  ;;  %v408_v38 = vcombine.high %v276_v36, %v276_v36  ;;  %v994_v36 = vpack.c.bf16 %v351_v29, %v350_v28 }
  0xf6   :  { %v277_v42 = vld [vmem:[#allocation2 + $0x8] sm:$0xff] }
  0xf7   :  { %v423_v45 = vcombine.high %v415_v37, %v415_v37  ;;  %v422_v46 = vrot.slane %v408_v38, %v414_v33  ;;  %v1404_v47 = vrot.slane %v277_v42, %v414_v33  ;;  %v425_v48 = vcombine.high %v277_v42, %v277_v42  ;;  %v401_v38 = vld [vmem:[%s1590_s2 + $0x3d8] sm:$0xff] }
  0xf8   :  { %v1026_v42 = vpack.c.bf16 %v383_v35, %v382_v34 }
  0xf9   :  { %514 = vmatprep.mubr.f32.mxu0 %v423_v45  ;;  %v424_v54 = vcombine.high %v422_v46, %v422_v46  ;;  %v440_v55 = vcombine.high %v1404_v47, %v1404_v47  ;;  %v1420_v57 = vrot.slane %v425_v48, %v414_v33  ;;  %v1024_v33 = vpack.c.bf16 %v399_v26, %v398_v25  ;;  %v385_v48 = vld [vmem:[%s1590_s2 + $0x358] sm:$0xff] }
  0xfa   :  { %515 = vmatmul.mubr.f32.vlgmr.msra.gmra.mrb[2].mxu0 %v415_v37  ;;  %v400_v37 = vld [vmem:[%s1590_s2 + $0x3d0] sm:$0xff] }
  0xfb   :  { %979 = vmatpush3.bf16.msra.mxu0 %v978_v41  ;;  %584 = vmatprep.mubr.f32.mxu1 %v424_v54  ;;  %v441_v63 = vcombine.high %v1420_v57, %v1420_v57  ;;  %v353_v41 = vld [vmem:[%s1590_s2 + $0x258] sm:$0xff]  ;;  %v1028_v45 = vpack.c.bf16 %v401_v38, %v400_v37  ;;  %v355_v54 = vld [vmem:[%s1590_s2 + $0x268] sm:$0xff] }
  0xfc   :  { %654 = vmatprep.mubr.f32.mxu0 %v440_v55  ;;  %585 = vmatmul.mubr.f32.vlgmr.msra.gmra.mrb[2].mxu1 %v422_v46  ;;  %v384_v46 = vld [vmem:[%s1590_s2 + $0x350] sm:$0xff]  ;;  %v998_v49 = vpack.c.bf16 %v353_v41, %v352_v40  ;;  %v1002_v62 = vpack.c.bf16 %v355_v54, %v354_v53 }
  0xfd   :  { %1011 = vmatpush3.bf16.msra.mxu1 %v1010_v51  ;;  %981 = vmatprep.subr.bf16.mxu0 %v980_v56  ;;  %v403_v51 = vld [vmem:[%s1590_s2 + $0x3e8] sm:$0xff]  ;;  %v1030_v55 = vpack.c.bf16 %v385_v48, %v384_v46  ;;  %v372_v56 = vld [vmem:[%s1590_s2 + $0x2f0] sm:$0xff] }
  0xfe   :  { %724 = vmatprep.mubr.f32.mxu1 %v441_v63  ;;  %1013 = vmatprep.subr.bf16.mxu1 %v1012_v60  ;;  %v1032_v59 = vpack.c.bf16 %v403_v51, %v402_v50  ;;  %v386_v60 = vld [vmem:[%s1590_s2 + $0x360] sm:$0xff]  ;;  %v404_v63 = vld [vmem:[%s1590_s2 + $0x3f0] sm:$0xff]  ;;  %v1004_v1 = vpack.c.bf16 %v373_v58, %v372_v56 }
  0xff   :  { %983 = vmatpush3.bf16.msra.mxu0 %v982_v0  ;;  %v405_v0 = vld [vmem:[%s1590_s2 + $0x3f8] sm:$0xff]  ;;  %v1034_v4 = vpack.c.bf16 %v387_v61, %v386_v60 }
 0x100   :  { %985 = vmatprep.subr.bf16.mxu0 %v984_v3  ;;  %v357_v3 = vld [vmem:[%s1590_s2 + $0x278] sm:$0xff]  ;;  %v1036_v5 = vpack.c.bf16 %v405_v0, %v404_v63 }
 0x101   :  { %1015 = vmatpush3.bf16.msra.mxu1 %v1014_v6  ;;  %v388_v6 = vld [vmem:[%s1590_s2 + $0x370] sm:$0xff]  ;;  %v1006_v8 = vpack.c.bf16 %v357_v3, %v356_v2  ;;  %s1075_s2 = smov [#allocation3]  }
 0x102   :  { %1017 = vmatprep.subr.bf16.mxu1 %v1016_v9  ;;  %v1038_v9 = vpack.c.bf16 %v389_v7, %v388_v6  ;;  %s738_s14 = sshll.u32 %s1075_s2, 4  ;;  %s739_s14 = int_to_ptr.vmem [resolvable:$true] %s738_s14 }
 0x103   :  { %987 = vmatpush3.bf16.msra.mxu0 %v986_v12  ;;  %s1047_s15 = scalar_lea.vmem %s739_s14, 32  ;;  %p1052_p1 = scmp.lt.s32.totalorder %s739_s14, %s739_s14 }
 0x104   :  { %989 = vmatprep.subr.bf16.mxu0 %v988_v15  ;;  %p1048_p0 = scmp.ne.s32.totalorder %s739_s14, %s1047_s15  ;;  %p1053_p2 = scmp.lt.s32.totalorder %s1047_s15, %s1047_s15 }
 0x105   :  { %1019 = vmatpush3.bf16.msra.mxu1 %v1018_v18 }
 0x106   :  { %1021 = vmatprep.subr.bf16.mxu1 %v1020_v21  ;;  %p1054_p3 = por %p1053_p2, %p1052_p1 }
 0x107   :  { %991 = vmatpush3.bf16.msra.mxu0 %v990_v24 }
 0x108   :  { %993 = vmatprep.subr.bf16.mxu0 %v992_v27  ;;  %p1055_p4 = pnand %p1054_p3, %p1048_p0 }
 0x109   :  { %1023 = vmatpush3.bf16.msra.mxu1 %v1022_v30 }
 0x10a   :  { %1025 = vmatprep.subr.bf16.mxu1 %v1024_v33 }
 0x10b   :  { %995 = vmatpush3.bf16.msra.mxu0 %v994_v36 }
 0x10c   :  { %997 = vmatprep.subr.bf16.mxu0 %v996_v39 }
 0x10d   :  { %1027 = vmatpush3.bf16.msra.mxu1 %v1026_v42 }
 0x10e   :  { %1029 = vmatprep.subr.bf16.mxu1 %v1028_v45 }
 0x10f   :  { %999 = vmatpush3.bf16.msra.mxu0 %v998_v49 }
 0x110   :  { %1001 = vmatprep.subr.bf16.mxu0 %v1000_v52 }
 0x111   :  { %1031 = vmatpush3.bf16.msra.mxu1 %v1030_v55 }
 0x112   :  { %1033 = vmatprep.subr.bf16.mxu1 %v1032_v59 }
 0x113   :  { %1003 = vmatpush3.bf16.msra.mxu0 %v1002_v62 }
 0x114   :  { %1005 = vmatprep.subr.bf16.mxu0 %v1004_v1 }
 0x115   :  { %1035 = vmatpush3.bf16.msra.mxu1 %v1034_v4 }
 0x116   :  { %1037 = vmatprep.subr.bf16.mxu1 %v1036_v5 }
 0x117   :  { %1007 = vmatpush3.bf16.msra.mxu0 %v1006_v8 }
 0x119   :  { %1039 = vmatpush3.bf16.msra.mxu1 %v1038_v9 }
 0x11a   :  { %655 = vmatmul.mubr.f32.vlgmr.msra.gmra.mrb[4].mxu0 %v1404_v47 }
 0x11c   :  { %725 = vmatmul.mubr.f32.vlgmr.msra.gmra.mrb[4].mxu1 %v1420_v57 }
 0x1cd   :  { %v784_v10 = vpop.f32.mrb[2].mxu0 }
 0x1ce   :  { %v785_v11 = vpop.f32.mrb[3].mxu0 }
 0x1cf   :  { %v786_v12 = vadd.f32 %v785_v11, %v784_v10  ;;  %v819_v13 = vpop.f32.mrb[2].mxu1 }
 0x1d0   :  { %v820_v14 = vpop.f32.mrb[3].mxu1 }
 0x1d1   :  { %v821_v15 = vadd.f32 %v820_v14, %v819_v13 }
 0x1d3   :  { %v587_v16 = vadd.f32 %v821_v15, %v786_v12 }
 0x1ed   :  { %v854_v17 = vpop.f32.mrb[4].mxu0 }
 0x1ee   :  { %v855_v18 = vpop.f32.mrb[5].mxu0 }
 0x1ef   :  { %v856_v19 = vadd.f32 %v855_v18, %v854_v17  ;;  %v889_v20 = vpop.f32.mrb[4].mxu1 }
 0x1f0   :  { %v890_v21 = vpop.f32.mrb[5].mxu1 }
 0x1f1   :  { %v657_v22 = vadd.f32 %v856_v19, %v587_v16  ;;  %v891_v23 = vadd.f32 %v890_v21, %v889_v20 }
 0x1f3   :  { %v727_v47 = vadd.f32 %v891_v23, %v657_v22 }
 0x1f5   :  { %731 = vst.msk [vmem:[#allocation3] sm:$0x3] %vm730_vm5, %v727_v47 }
 0x1f6   :  { %1058 = shalt.err (!%p1055_p4)
}
 0x1f7   :  { %s1059_s18 = scalar_lea.hbm %s1591_s3, 32 }
 0x1f8   :  { %p1060_p5 = scmp.ne.s32.totalorder %s1591_s3, %s1059_s18  ;;  %p1063_p6 = scmp.lt.u32.totalorder %s1059_s18, %s1591_s3 }
 0x1fa   :  { %p1065_p7 = pnand %p1063_p6, %p1060_p5 }
 0x1fc   :  { %1068 = shalt.err (!%p1065_p7)
}
 0x1fd   :  { %741 = dma.vmem_to_hbm [thread:$0]  %s739_s14, 32, %s1591_s3, [#allocation4]  }
 0x1fe   :  { %1069 = dma.done.wait [#allocation4], 32  }
 0x1ff   :  { %1070 = vsyncadd [#allocation4], 4294967264 }
 0x200   :  { %745 = vsyncpa [#allocation4], 1 }

</bundles_post_ra>
